<compile_context>
chip_gen: v6e
topology: v6e:2x2x1
jax: 0.10.0
libtpu: 0.0.40
codegen_flags: <defaults>
</compile_context>

<pallas_src>
import math

import jax
import jax.numpy as jnp
from jax.experimental import pallas as pl
from jax.experimental.pallas import tpu as pltpu

_MIB = 1024 * 1024


def _round_up(x, m):
    return ((x + m - 1) // m) * m


def _vmem_capacity_bytes():
    """Physical per-core VMEM; conservative 64 MiB (v7x) fallback."""
    try:
        info = pltpu.get_tpu_info()
        cap = getattr(info, "vmem_capacity_bytes", None)
        if cap:
            return int(cap)
    except Exception:
        pass
    return 64 * _MIB


def _effective_rate(rate, l):
    if l <= 2:
        return 0.0
    return 1.0 - math.log(rate / (l + 1) + 1.0)


def _feature_mask(key, f, eff_rate):
    # TODO(synk): python random.shuffle of a one-hot is emulated with a
    # uniformly random one-hot position (same distribution, different RNG
    # stream than the PyTorch layer).
    k_unif, k_pos = jax.random.split(key)
    drop = jax.random.uniform(k_unif, (f,), dtype=jnp.float32) < eff_rate
    pos = jax.random.randint(k_pos, (), 0, f)
    adding = jnp.arange(f) == pos
    return jnp.logical_or(drop, adding)


def _mask_select_kernel(mask_ref, last_ref, cur_ref, out_ref):
    # mask_ref: (1, TILE_F) float32, 1.0 where the feature column is "dropped"
    # last_ref / cur_ref / out_ref: (TILE_N, TILE_F) in the data dtype
    m = mask_ref[...]
    # out = hi + input  ==  where(mask, last_layer, current_layer)
    out_ref[...] = jnp.where(m != 0.0, last_ref[...], cur_ref[...])


def mask_layer_forward(last_layer, current_layer, rate, l, key):
    """Pallas implementation of MaskLayer.forward.

    last_layer, current_layer: [N, F] (same shape/dtype)
    rate: python float, l: python int, key: jax PRNG key for mask sampling.
    """
    assert last_layer.shape == current_layer.shape
    assert last_layer.ndim == 2
    assert last_layer.dtype == current_layer.dtype
    n, f = last_layer.shape
    dtype = last_layer.dtype
    itemsize = jnp.dtype(dtype).itemsize

    eff_rate = _effective_rate(rate, l)
    mask = _feature_mask(key, f, eff_rate).astype(jnp.float32)  # (f,)

    # --- lane-dense packing: [N, F] -> [N/k, k*F] with k*F a multiple of 128.
    # Taken ONLY when it is a pure (free) reshape; ragged N falls back to the
    # copy-free unpacked path (full-width feature block, partial-lane stores).
    k = 128 // math.gcd(f, 128)
    if k > 1 and n % k == 0:
        rows, feat = n // k, k * f
        last_w = last_layer.reshape(rows, feat)
        cur_w = current_layer.reshape(rows, feat)
        mask_w = jnp.tile(mask, (k,))
    else:
        rows, feat = n, f
        last_w, cur_w = last_layer, current_layer
        mask_w = mask

    # --- feature tile: one full-width tile when it fits, else wide 2048-lane
    # tiles with a masked partial tail (cdiv grid, no padding of the data).
    tile_f = feat if feat <= 2048 else 2048
    f_tiles = pl.cdiv(feat, tile_f)

    # --- VMEM budget (generation-aware; never request the full v7x 64 MiB) ---
    vmem_cap = _vmem_capacity_bytes()
    scoped_limit = max(16 * _MIB, min(vmem_cap - 12 * _MIB, 96 * _MIB))
    block_budget = scoped_limit - 4 * _MIB  # headroom: mask block, sems, scratch

    sub = {4: 8, 2: 16, 1: 32}.get(itemsize, 8)        # sublane alignment
    per_row = _round_up(tile_f, 128) * itemsize        # VMEM bytes per block row
    live_blocks = 6                                    # (2 in + 1 out) double-buffered
    tile_n = (block_budget // (live_blocks * per_row)) // sub * sub
    tile_n = max(sub, tile_n)
    tile_n = min(tile_n, _round_up(rows, sub))
    # Megacore / dual-TC: keep >= 2 row blocks when there is enough work.
    if rows > 4 * sub and pl.cdiv(rows, tile_n) < 2:
        tile_n = _round_up(pl.cdiv(rows, 2), sub)

    grid = (pl.cdiv(rows, tile_n), f_tiles)

    # Mask is tiny; with a single feature tile its block index is constant, so
    # it is DMA'd into VMEM once and stays resident across all row blocks.
    mask_cols = f_tiles * tile_f
    mask_2d = mask_w.reshape(1, feat)
    if mask_cols != feat:
        mask_2d = jnp.pad(mask_2d, ((0, 0), (0, mask_cols - feat)))

    cost = pl.CostEstimate(
        flops=rows * feat,
        transcendentals=0,
        bytes_accessed=3 * rows * feat * itemsize + mask_cols * 4,
    )

    out = pl.pallas_call(
        _mask_select_kernel,
        out_shape=jax.ShapeDtypeStruct((rows, feat), dtype),
        grid_spec=pltpu.PrefetchScalarGridSpec(
            num_scalar_prefetch=0,
            grid=grid,
            in_specs=[
                pl.BlockSpec((1, tile_f), lambda i, j: (0, j)),        # mask
                pl.BlockSpec((tile_n, tile_f), lambda i, j: (i, j)),   # last
                pl.BlockSpec((tile_n, tile_f), lambda i, j: (i, j)),   # current
            ],
            out_specs=pl.BlockSpec((tile_n, tile_f), lambda i, j: (i, j)),
        ),
        compiler_params=pltpu.CompilerParams(
            dimension_semantics=("parallel", "parallel"),
            vmem_limit_bytes=scoped_limit,
        ),
        cost_estimate=cost,
    )(mask_2d, last_w, cur_w)

    if (rows, feat) != (n, f):
        out = out.reshape(n, f)  # free: inverse of the packing reshape
    return out


def _reference(last_layer, current_layer, rate, l, key):
    """Pure-JAX reference reproducing the same semantics with the same mask."""
    _, f = last_layer.shape
    eff_rate = _effective_rate(rate, l)
    mask = _feature_mask(key, f, eff_rate)
    hi = jnp.where(mask[None, :], 0.0, current_layer)
    inp = jnp.where(mask[None, :], last_layer, 0.0)
    return hi + inp


if __name__ == "__main__":
    root = jax.random.PRNGKey(0)

    # Case 1: F < 128, N % k == 0 -> free lane-dense packing path.
    k1, k2, k3 = jax.random.split(root, 3)
    N1, F1 = 16, 32
    last1 = jax.random.normal(k1, (N1, F1), dtype=jnp.float32)
    cur1 = jax.random.normal(k2, (N1, F1), dtype=jnp.float32)
    out1 = jax.block_until_ready(mask_layer_forward(last1, cur1, 0.5, 4, k3))
    ref1 = _reference(last1, cur1, 0.5, 4, k3)
    assert out1.shape == (N1, F1) and out1.dtype == last1.dtype
    assert jnp.allclose(out1, ref1), "case 1: Pallas output does not match reference"

    # Case 2: ragged N (N % k != 0) -> copy-free unpacked path, partial row
    # block, and the >=2-row-block (dual TensorCore) split.
    k4, k5, k6 = jax.random.split(jax.random.PRNGKey(1), 3)
    N2, F2 = 50, 96
    last2 = jax.random.normal(k4, (N2, F2), dtype=jnp.float32)
    cur2 = jax.random.normal(k5, (N2, F2), dtype=jnp.float32)
    out2 = jax.block_until_ready(mask_layer_forward(last2, cur2, 0.3, 5, k6))
    ref2 = _reference(last2, cur2, 0.3, 5, k6)
    assert out2.shape == (N2, F2) and out2.dtype == last2.dtype
    assert jnp.allclose(out2, ref2), "case 2: Pallas output does not match reference"

    # Case 3: F multiple of 128 (no packing), bf16 (16-row sublane alignment),
    # ragged row tail, l <= 2 branch (rate forced to 0).
    k7, k8, k9 = jax.random.split(jax.random.PRNGKey(2), 3)
    N3, F3 = 33, 128
    last3 = jax.random.normal(k7, (N3, F3), dtype=jnp.bfloat16)
    cur3 = jax.random.normal(k8, (N3, F3), dtype=jnp.bfloat16)
    out3 = jax.block_until_ready(mask_layer_forward(last3, cur3, 0.7, 2, k9))
    ref3 = _reference(last3, cur3, 0.7, 2, k9)
    assert out3.shape == (N3, F3) and out3.dtype == last3.dtype
    assert jnp.allclose(out3.astype(jnp.float32), ref3.astype(jnp.float32)), \
        "case 3: Pallas output does not match reference"

    print("KERNEL_OK")
</pallas_src>

<mosaic_0001>
module attributes {stable_mosaic.version = 11 : i64} {
  func.func @_mask_select_kernel(%arg0: i32, %arg1: i32, %arg2: memref<1x128xf32, #tpu.memory_space<vmem>>, %arg3: memref<8x128xf32, #tpu.memory_space<vmem>>, %arg4: memref<8x128xf32, #tpu.memory_space<vmem>>, %arg5: memref<8x128xf32, #tpu.memory_space<vmem>>) attributes {dimension_semantics = [#tpu.dimension_semantics<parallel>, #tpu.dimension_semantics<parallel>], iteration_bounds = array<i64: 1, 1>, scalar_prefetch = 0 : i64, scratch_operands = 0 : i64, tpu.core_type = #tpu.core_type<tc>, window_params = [{transform_indices = @transform_0, window_bounds = array<i64: 1, 128>}, {transform_indices = @transform_1, window_bounds = array<i64: 8, 128>}, {transform_indices = @transform_2, window_bounds = array<i64: 8, 128>}, {transform_indices = @transform_3, window_bounds = array<i64: 8, 128>}]} {
    %c0 = arith.constant 0 : index
    %c0_0 = arith.constant 0 : index
    %0 = vector.load %arg2[%c0, %c0_0] : memref<1x128xf32, #tpu.memory_space<vmem>>, vector<1x128xf32>
    %cst = arith.constant 0.000000e+00 : f32
    %1 = vector.broadcast %cst : f32 to vector<1x128xf32>
    %2 = arith.cmpf one, %0, %1 : vector<1x128xf32>
    %c0_1 = arith.constant 0 : index
    %c0_2 = arith.constant 0 : index
    %3 = vector.load %arg3[%c0_1, %c0_2] : memref<8x128xf32, #tpu.memory_space<vmem>>, vector<8x128xf32>
    %c0_3 = arith.constant 0 : index
    %c0_4 = arith.constant 0 : index
    %4 = vector.load %arg4[%c0_3, %c0_4] : memref<8x128xf32, #tpu.memory_space<vmem>>, vector<8x128xf32>
    %5 = vector.shape_cast %2 : vector<1x128xi1> to vector<1x128xi1>
    %6 = vector.broadcast %5 : vector<1x128xi1> to vector<8x128xi1>
    %7 = arith.select %6, %3, %4 : vector<8x128xi1>, vector<8x128xf32>
    %c0_5 = arith.constant 0 : index
    %c0_6 = arith.constant 0 : index
    %8 = vector.load %arg5[%c0_5, %c0_6] : memref<8x128xf32, #tpu.memory_space<vmem>>, vector<8x128xf32>
    tpu.vector_store %arg5[%c0_5, %c0_6], %7 {strides = array<i32>} : memref<8x128xf32, #tpu.memory_space<vmem>>, vector<8x128xf32>,
    return
  }
  func.func @transform_0(%arg0: i32, %arg1: i32) -> (i32, i32) {
    %c0_i32 = arith.constant 0 : i32
    %c0_i32_0 = arith.constant 0 : i32
    return %c0_i32, %arg1 : i32, i32
  }
  func.func @transform_1(%arg0: i32, %arg1: i32) -> (i32, i32) {
    %c0_i32 = arith.constant 0 : i32
    return %arg0, %arg1 : i32, i32
  }
  func.func @transform_2(%arg0: i32, %arg1: i32) -> (i32, i32) {
    %c0_i32 = arith.constant 0 : i32
    return %arg0, %arg1 : i32, i32
  }
  func.func @transform_3(%arg0: i32, %arg1: i32) -> (i32, i32) {
    %c0_i32 = arith.constant 0 : i32
    return %arg0, %arg1 : i32, i32
  }
}

</mosaic_0001>

<bundles_post_ra>
// kernel: tpu_custom_call.1
= control target key start
LH: loop header
LB: loop body
LE: loop exit
PB: predicated region body
PF: predicated region fallthrough
CT: control target
= control target key end

     0   :  { %8 = vsyncpa [#allocation3], 0  ;;  %s225_s0 = inlined_call_operand.hbm [shape: f32[1,128], index: 0, kind: input, shape index: {}]   ;;  %s226_s1 = inlined_call_operand.hbm [shape: f32[4,128], index: 1, kind: input, shape index: {}]   ;;  %s227_s2 = inlined_call_operand.hbm [shape: f32[4,128], index: 2, kind: input, shape index: {}]   ;;  %s228_s3 = inlined_call_operand.hbm [shape: f32[4,128], index: 3, kind: output, shape index: {}]  }
   0x1   :  { %9 = vsyncpa [#allocation6], 0 }
   0x2   :  { %10 = vsyncpa [#allocation4], 0  ;;  %s177_s12 = smov [#allocation2]  }
   0x3   :  { %s17_s13 = sshll.u32 %s177_s12, 4  ;;  %s18_s13 = int_to_ptr.vmem [resolvable:$true] %s17_s13 }
   0x4   :  { %s99_s14 = scalar_lea.vmem %s18_s13, 16  ;;  %s103_s15 = scalar_lea.vmem %s18_s13, 32 }
   0x5   :  { %p100_p0 = scmp.ne.s32.totalorder %s18_s13, %s99_s14  ;;  %p104_p1 = scmp.lt.s32.totalorder %s18_s13, %s18_s13 }
   0x6   :  { %p105_p2 = scmp.lt.s32.totalorder %s103_s15, %s99_s14 }
   0x8   :  { %p106_p3 = por %p105_p2, %p104_p1 }
   0xa   :  { %p107_p4 = pnand %p106_p3, %p100_p0 }
   0xc   :  { %110 = shalt.err (!%p107_p4)
}
   0xd   :  { %20 = dma.hbm_to_vmem [thread:$0]  %s225_s0, 16, %s18_s13, [#allocation3]  }
   0xe   :  { %25 = vsyncadd [#allocation6], 64  ;;  %s178_s18 = smov [#allocation5]  }
   0xf   :  { %s26_s19 = sshll.u32 %s178_s18, 4  ;;  %s27_s19 = int_to_ptr.vmem [resolvable:$true] %s26_s19 }
  0x10   :  { %s119_s20 = scalar_lea.vmem %s27_s19, 64  ;;  %s123_s21 = scalar_lea.vmem %s27_s19, 128 }
  0x11   :  { %p120_p5 = scmp.ne.s32.totalorder %s27_s19, %s119_s20  ;;  %p124_p6 = scmp.lt.s32.totalorder %s27_s19, %s27_s19 }
  0x12   :  { %p125_p7 = scmp.lt.s32.totalorder %s123_s21, %s119_s20 }
  0x14   :  { %p126_p8 = por %p125_p7, %p124_p6 }
  0x16   :  { %p127_p9 = pnand %p126_p8, %p120_p5 }
  0x18   :  { %130 = shalt.err (!%p127_p9)
}
  0x19   :  { %s179_s22 = smov 64   ;;  %s180_s23 = smov 4  }
  0x1a   :  { %32 = dma.hbm_to_vmem [thread:$0]  %s226_s1, 64, %s27_s19, [#allocation6], %s179_s22, %s179_s22, %s180_s23  }
  0x1b   :  { %37 = vsyncadd [#allocation6], 64  ;;  %s181_s0 = smov [#allocation7]  }
  0x1c   :  { %s38_s26 = sshll.u32 %s181_s0, 4  ;;  %s39_s26 = int_to_ptr.vmem [resolvable:$true] %s38_s26 }
  0x1d   :  { %s139_s27 = scalar_lea.vmem %s39_s26, 64  ;;  %s143_s28 = scalar_lea.vmem %s39_s26, 128 }
  0x1e   :  { %p140_p10 = scmp.ne.s32.totalorder %s39_s26, %s139_s27  ;;  %p144_p11 = scmp.lt.s32.totalorder %s39_s26, %s39_s26 }
  0x1f   :  { %p145_p12 = scmp.lt.s32.totalorder %s143_s28, %s139_s27 }
  0x21   :  { %p146_p13 = por %p145_p12, %p144_p11 }
  0x23   :  { %p147_p0 = pnand %p146_p13, %p140_p10 }
  0x25   :  { %150 = shalt.err (!%p147_p0)
}
  0x26   :  { %44 = dma.hbm_to_vmem [thread:$0]  %s227_s2, 64, %s39_s26, [#allocation6], %s179_s22, %s179_s22, %s180_s23  }
  0x27   :  { %171 = dma.done.wait [#allocation3], 16  }
  0x28   :  { %172 = vsyncadd [#allocation3], 4294967280 }
  0x29   :  { %173 = dma.done.wait [#allocation6], 256  }
  0x2a   :  { %174 = vsyncadd [#allocation6], 4294967040  ;;  %v59_v0 = vlaneseq  ;;  %v54_v3 = vld [vmem:[#allocation2] sm:$0x1]  ;;  %v182_v4 = vmov 0   ;;  %v56_v6 = vld [vmem:[#allocation5] sm:$0xff] }
  0x2b   :  { %vm55_vm0 = vcmp.ne.f32.partialorder %v54_v3, 0.0  ;;  %v57_v7 = vld [vmem:[#allocation7] sm:$0xff] }
  0x2c   :  { %v60_v1 = vshrl.u32 %v59_v0, 7  ;;  %v58_v5 = vsel %vm55_vm0, 1, %v182_v4 }
  0x2e   :  { %v61_v2 = vsub.s32 0, %v60_v1 }
  0x30   :  { %v62_v8 = vrot.slane %v58_v5, %v61_v2 }
  0x32   :  { %vm63_vm1 = vcmp.eq.s32.totalorder %v62_v8, 1 }
  0x33   :  { %v64_v9 = vsel %vm63_vm1, %v56_v6, %v57_v7 }
  0x34   :  { %65 = vst [vmem:[#allocation8] sm:$0xff] %v64_v9 }
  0x35   :  { %70 = vsyncadd [#allocation4], 64  ;;  %s183_s1 = smov [#allocation8]  }
  0x36   :  { %s71_s2 = sshll.u32 %s183_s1, 4  ;;  %s72_s2 = int_to_ptr.vmem [resolvable:$true] %s71_s2 }
  0x37   :  { %s151_s4 = scalar_lea.vmem %s72_s2, 64  ;;  %s155_s5 = scalar_lea.vmem %s72_s2, 128 }
  0x38   :  { %p152_p1 = scmp.ne.s32.totalorder %s72_s2, %s151_s4  ;;  %p156_p2 = scmp.lt.s32.totalorder %s72_s2, %s72_s2 }
  0x39   :  { %p157_p3 = scmp.lt.s32.totalorder %s155_s5, %s151_s4 }
  0x3b   :  { %p158_p4 = por %p157_p3, %p156_p2 }
  0x3d   :  { %p159_p5 = pnand %p158_p4, %p152_p1 }
  0x3f   :  { %162 = shalt.err (!%p159_p5)
}
  0x40   :  { %77 = dma.vmem_to_hbm [thread:$0]  %s72_s2, 64, %s228_s3, [#allocation4], %s179_s22, %s179_s22, %s180_s23  }
  0x41   :  { %175 = dma.done.wait [#allocation4], 128  }
  0x42   :  { %176 = vsyncadd [#allocation4], 4294967168 }
  0x43   :  { %81 = vsyncpa [#allocation3], 1 }
  0x44   :  { %82 = vsyncpa [#allocation6], 1 }
  0x45   :  { %83 = vsyncpa [#allocation4], 1 }

</bundles_post_ra>
